<compile_context>
chip_gen: v6e
topology: v6e:2x2x1
jax: 0.10.0
libtpu: 0.0.40
codegen_flags: <defaults>
</compile_context>

<pallas_src>
import math
import functools

import jax
import jax.numpy as jnp
from jax.experimental import pallas as pl
from jax.experimental.pallas import tpu as pltpu


def _round_up(x, m):
    return (x + m - 1) // m * m


# --------------------------- prologue: Wh / f1 / f2 --------------------------
def _wh_kernel(h_ref, w_ref, a1_ref, a2_ref, wh_ref, f1_ref, f2_ref):
    wh = jnp.dot(h_ref[...], w_ref[...], preferred_element_type=jnp.float32)
    wh_ref[...] = wh.astype(wh_ref.dtype)
    # Row/column logit terms: VPU multiply + lane reduction (no width-1 MXU).
    f1_ref[...] = jnp.sum(wh * a1_ref[...], axis=-1, keepdims=True)
    f2_ref[...] = jnp.sum(wh * a2_ref[...], axis=-1, keepdims=True)


# --------------------------- attention (online softmax) ----------------------
def _gat_attn_kernel(cols_ref, ncols_ref,     # SMEM scalar prefetch
                     f1_ref,                  # (TM, 1)   f32   row logit term
                     f2_ref,                  # (1, TN)   f32   col logit term
                     wh_ref,                  # (TN, Fout_p)    Wh column tile
                     adj_ref,                 # (TM, TN)  int8  adjacency tile
                     out_ref,                 # (TM, Fout_p) f32
                     m_sc, l_sc, acc_sc,      # VMEM scratch
                     *, alpha: float):
    i = pl.program_id(0)
    j = pl.program_id(1)
    last_j = pl.num_programs(1) - 1

    @pl.when(j == 0)
    def _init():
        m_sc[...] = jnp.full(m_sc.shape, -jnp.inf, jnp.float32)
        l_sc[...] = jnp.zeros(l_sc.shape, jnp.float32)
        acc_sc[...] = jnp.zeros(acc_sc.shape, jnp.float32)

    @pl.when(j < ncols_ref[i])                # only column blocks with edges
    def _compute():
        e = f1_ref[...] + f2_ref[...]         # (TM,TN) broadcast add (VPU)
        e = jnp.where(e > 0, e, alpha * e)    # LeakyReLU(alpha)
        s = jnp.where(adj_ref[...] > 0, e, -9e15)

        m_prev = m_sc[...]
        m_new = jnp.maximum(m_prev, jnp.max(s, axis=-1, keepdims=True))
        corr = jnp.exp(m_prev - m_new)
        p = jnp.exp(s - m_new)
        l_sc[...] = corr * l_sc[...] + jnp.sum(p, axis=-1, keepdims=True)
        acc_sc[...] = corr * acc_sc[...] + jnp.dot(
            p.astype(wh_ref.dtype), wh_ref[...],
            preferred_element_type=jnp.float32)
        m_sc[...] = m_new

    @pl.when(j == last_j)
    def _finalize():
        l = l_sc[...]
        # Rows with zero processed edges keep l == 0; guard against NaN.
        denom = jnp.where(l > 0.0, l, 1.0)
        out_ref[...] = (acc_sc[...] * pl.reciprocal(denom, approx=False)
                        ).astype(out_ref.dtype)


def graph_attention_layer(h, adj, W, a, *, alpha=0.2, tm=256, tn=512,
                          wh_dtype=jnp.float32):
    """Pallas GAT forward (inference; attention dropout = identity).

    h: (N, Fin), adj: (N, N), W: (Fin, Fout), a: (2*Fout, 1).
    """
    assert tm % 32 == 0, "tm must be a multiple of 32 (int8 adjacency sublane tile)"
    assert tn % 128 == 0, "tn must be a multiple of 128 (lane tile)"
    N, fin = h.shape
    fout = W.shape[1]
    f32 = jnp.float32

    fin_p = _round_up(fin, 128)
    fout_p = _round_up(fout, 128)
    n_p = _round_up(N, math.lcm(tm, tn))
    num_i, num_j = n_p // tm, n_p // tn

    # Zero-padding keeps the math exact: padded feature columns contribute 0
    # to every dot product, padded adjacency entries are masked to -9e15.
    h_p = jnp.zeros((n_p, fin_p), f32).at[:N, :fin].set(h.astype(f32))
    w_p = jnp.zeros((fin_p, fout_p), f32).at[:fin, :fout].set(W.astype(f32))
    a1 = jnp.zeros((1, fout_p), f32).at[0, :fout].set(a[:fout, 0].astype(f32))
    a2 = jnp.zeros((1, fout_p), f32).at[0, :fout].set(a[fout:, 0].astype(f32))
    adj_i8 = jnp.zeros((n_p, n_p), jnp.int8).at[:N, :N].set(
        (adj > 0).astype(jnp.int8))

    # --- prologue: Wh, f1, f2 (one pass over row tiles) ----------------------
    tr = tm
    num_r = n_p // tr
    wh_bytes = jnp.dtype(wh_dtype).itemsize
    pro_cost = pl.CostEstimate(
        flops=2 * n_p * fin_p * fout_p + 4 * n_p * fout_p,
        transcendentals=0,
        bytes_accessed=(n_p * fin_p * 4 + fin_p * fout_p * 4 + 2 * fout_p * 4
                        + n_p * fout_p * wh_bytes + 2 * n_p * 4),
    )
    wh, f1, f2 = pl.pallas_call(
        _wh_kernel,
        out_shape=(jax.ShapeDtypeStruct((n_p, fout_p), wh_dtype),
                   jax.ShapeDtypeStruct((n_p, 1), f32),
                   jax.ShapeDtypeStruct((n_p, 1), f32)),
        grid_spec=pltpu.PrefetchScalarGridSpec(
            num_scalar_prefetch=0,
            grid=(num_r,),
            in_specs=[
                pl.BlockSpec((tr, fin_p), lambda r: (r, 0)),
                pl.BlockSpec((fin_p, fout_p), lambda r: (0, 0)),   # W resident
                pl.BlockSpec((1, fout_p), lambda r: (0, 0)),       # a1 resident
                pl.BlockSpec((1, fout_p), lambda r: (0, 0)),       # a2 resident
            ],
            out_specs=[
                pl.BlockSpec((tr, fout_p), lambda r: (r, 0)),
                pl.BlockSpec((tr, 1), lambda r: (r, 0)),
                pl.BlockSpec((tr, 1), lambda r: (r, 0)),
            ],
        ),
        compiler_params=pltpu.CompilerParams(
            dimension_semantics=("parallel",),
            vmem_limit_bytes=48 * 1024 * 1024),
        cost_estimate=pro_cost,
    )(h_p, w_p, a1, a2)
    f2_row = f2.reshape(1, n_p)   # lane-dense (1, N_p) column term

    # --- compacted nonzero-block schedule (scalar prefetch) ------------------
    blk_nnz = (adj_i8.astype(jnp.int32)
               .reshape(num_i, tm, num_j, tn).sum(axis=(1, 3)) > 0)   # (num_i,num_j)
    ncols = blk_nnz.sum(axis=1).astype(jnp.int32)                     # (num_i,)
    order = jnp.argsort((~blk_nnz).astype(jnp.int32), axis=1).astype(jnp.int32)
    jj = jnp.arange(num_j, dtype=jnp.int32)[None, :]
    take = jnp.minimum(jj, jnp.maximum(ncols - 1, 0)[:, None])
    # First ncols[i] entries: nonzero column blocks in order; padded slots
    # repeat the last valid block (so their DMA is skipped by the pipeline).
    cols_flat = jnp.take_along_axis(order, take, axis=1).reshape(-1)

    # --- attention pallas_call -----------------------------------------------
    kernel = functools.partial(_gat_attn_kernel, alpha=float(alpha))

    def f1_map(i, j, cols, ncols):
        return (i, 0)

    def f2_map(i, j, cols, ncols):
        return (0, cols[i * num_j + j])

    def wh_map(i, j, cols, ncols):
        return (cols[i * num_j + j], 0)

    def adj_map(i, j, cols, ncols):
        return (i, cols[i * num_j + j])

    def out_map(i, j, cols, ncols):
        return (i, 0)

    grid_spec = pltpu.PrefetchScalarGridSpec(
        num_scalar_prefetch=2,
        grid=(num_i, num_j),
        in_specs=[
            pl.BlockSpec((tm, 1), f1_map),           # f1 (row term, resident per i)
            pl.BlockSpec((1, tn), f2_map),           # f2 (column term)
            pl.BlockSpec((tn, fout_p), wh_map),      # Wh column tile
            pl.BlockSpec((tm, tn), adj_map),         # adjacency tile (int8)
        ],
        out_specs=pl.BlockSpec((tm, fout_p), out_map),
        scratch_shapes=[
            pltpu.VMEM((tm, 1), f32),        # m  (running row max)
            pltpu.VMEM((tm, 1), f32),        # l  (running denominator)
            pltpu.VMEM((tm, fout_p), f32),   # acc (unnormalized output)
        ],
    )

    # Dense upper-bound estimate (static shapes only; actual work/traffic is
    # proportional to nonzero blocks thanks to the compacted schedule).
    attn_cost = pl.CostEstimate(
        flops=2 * n_p * n_p * fout_p + 10 * n_p * n_p,
        transcendentals=n_p * n_p + n_p * num_j,
        bytes_accessed=(n_p * n_p                              # int8 adjacency
                        + num_i * n_p * fout_p * wh_bytes      # Wh column stream
                        + num_i * n_p * 4                      # f2 stream
                        + n_p * 4                              # f1
                        + n_p * fout_p * 4),                   # output
    )

    out_p = pl.pallas_call(
        kernel,
        out_shape=jax.ShapeDtypeStruct((n_p, fout_p), f32),
        grid_spec=grid_spec,
        compiler_params=pltpu.CompilerParams(
            dimension_semantics=("parallel", "arbitrary"),
            vmem_limit_bytes=48 * 1024 * 1024),
        cost_estimate=attn_cost,
    )(cols_flat, ncols, f1, f2_row, wh, adj_i8)

    return out_p[:N, :fout]


def _xavier_uniform(key, shape):
    fan_in, fan_out = shape[0], shape[1]
    bound = math.sqrt(6.0 / (fan_in + fan_out))
    return jax.random.uniform(key, shape, jnp.float32, minval=-bound, maxval=bound)


def _reference(h, adj, W, a, alpha=0.2):
    """Pure-JAX reference mirroring the PyTorch forward (eval mode)."""
    Wh = h @ W
    fout = Wh.shape[1]
    a1, a2 = a[:fout, :], a[fout:, :]
    e = (Wh @ a1) + (Wh @ a2).T
    e = jnp.where(e > 0, e, alpha * e)
    att = jnp.where(adj > 0, e, jnp.full_like(e, -9e15))
    att = jax.nn.softmax(att, axis=1)
    return att @ Wh


if __name__ == "__main__":
    # Small shapes consistent with the module: N nodes, in_features -> out_features.
    N, in_features, out_features = 200, 16, 32
    alpha = 0.2

    key = jax.random.PRNGKey(0)
    k_w, k_a, k_h, k_adj = jax.random.split(key, 4)

    W = _xavier_uniform(k_w, (in_features, out_features))
    a = _xavier_uniform(k_a, (2 * out_features, 1))
    h = jax.random.normal(k_h, (N, in_features), jnp.float32)
    # Sparse random adjacency with self-loops (every row has >= 1 edge).
    adj = (jax.random.uniform(k_adj, (N, N)) > 0.8).astype(jnp.float32)
    adj = jnp.maximum(adj, jnp.eye(N, dtype=jnp.float32))

    ref = _reference(h, adj, W, a, alpha=alpha)

    # Small tiles exercise the multi-block online softmax + compacted schedule;
    # default tiles are the production-sized configuration.
    out_small = graph_attention_layer(h, adj, W, a, alpha=alpha, tm=64, tn=128)
    out_big = graph_attention_layer(h, adj, W, a, alpha=alpha)          # tm=256, tn=512
    out_small, out_big = jax.block_until_ready((out_small, out_big))

    for out in (out_small, out_big):
        assert out.shape == (N, out_features)
        max_err = float(jnp.max(jnp.abs(out - ref)))
        assert jnp.allclose(out, ref, atol=1e-4, rtol=1e-4), \
            f"mismatch vs reference, max_err={max_err}"

    print("KERNEL_OK")
</pallas_src>

<mosaic_0001>
module attributes {stable_mosaic.version = 11 : i64} {
  func.func @_wh_kernel(%arg0: i32, %arg1: memref<64x128xf32, #tpu.memory_space<vmem>>, %arg2: memref<128x128xf32, #tpu.memory_space<vmem>>, %arg3: memref<1x128xf32, #tpu.memory_space<vmem>>, %arg4: memref<1x128xf32, #tpu.memory_space<vmem>>, %arg5: memref<64x128xf32, #tpu.memory_space<vmem>>, %arg6: memref<64x1xf32, #tpu.memory_space<vmem>>, %arg7: memref<64x1xf32, #tpu.memory_space<vmem>>) attributes {dimension_semantics = [#tpu.dimension_semantics<parallel>], iteration_bounds = array<i64: 4>, scalar_prefetch = 0 : i64, scratch_operands = 0 : i64, tpu.core_type = #tpu.core_type<tc>, window_params = [{transform_indices = @transform_0, window_bounds = array<i64: 64, 128>}, {pipeline_mode = #tpu.pipeline_mode<synchronous>, transform_indices = @transform_1, window_bounds = array<i64: 128, 128>}, {pipeline_mode = #tpu.pipeline_mode<synchronous>, transform_indices = @transform_2, window_bounds = array<i64: 1, 128>}, {pipeline_mode = #tpu.pipeline_mode<synchronous>, transform_indices = @transform_3, window_bounds = array<i64: 1, 128>}, {transform_indices = @transform_4, window_bounds = array<i64: 64, 128>}, {transform_indices = @transform_5, window_bounds = array<i64: 64, 1>}, {transform_indices = @transform_6, window_bounds = array<i64: 64, 1>}]} {
    %c0 = arith.constant 0 : index
    %c0_0 = arith.constant 0 : index
    %0 = vector.load %arg1[%c0, %c0_0] : memref<64x128xf32, #tpu.memory_space<vmem>>, vector<64x128xf32>
    %c0_1 = arith.constant 0 : index
    %c0_2 = arith.constant 0 : index
    %1 = vector.load %arg2[%c0_1, %c0_2] : memref<128x128xf32, #tpu.memory_space<vmem>>, vector<128x128xf32>
    %cst = arith.constant dense<0.000000e+00> : vector<64x128xf32>
    %2 = tpu.matmul %0, %1, %cst {dimension_numbers = #tpu.dot_dimension_numbers<[1], [0], [0], [1], [0, 0, 1, 1], [], []>} : vector<64x128xf32>, vector<128x128xf32>, vector<64x128xf32> -> vector<64x128xf32>
    %c0_3 = arith.constant 0 : index
    %c0_4 = arith.constant 0 : index
    %3 = vector.load %arg5[%c0_3, %c0_4] : memref<64x128xf32, #tpu.memory_space<vmem>>, vector<64x128xf32>
    tpu.vector_store %arg5[%c0_3, %c0_4], %2 {strides = array<i32>} : memref<64x128xf32, #tpu.memory_space<vmem>>, vector<64x128xf32>,
    %c0_5 = arith.constant 0 : index
    %c0_6 = arith.constant 0 : index
    %4 = vector.load %arg3[%c0_5, %c0_6] : memref<1x128xf32, #tpu.memory_space<vmem>>, vector<1x128xf32>
    %5 = vector.broadcast %4 : vector<1x128xf32> to vector<64x128xf32>
    %6 = arith.mulf %2, %5 : vector<64x128xf32>
    %cst_7 = arith.constant dense<0.000000e+00> : vector<64xf32>
    %7 = vector.multi_reduction <add>, %6, %cst_7 [1] : vector<64x128xf32> to vector<64xf32>
    %8 = vector.shape_cast %7 : vector<64xf32> to vector<64x1xf32>
    %c0_8 = arith.constant 0 : index
    %c0_9 = arith.constant 0 : index
    %9 = vector.load %arg6[%c0_8, %c0_9] : memref<64x1xf32, #tpu.memory_space<vmem>>, vector<64x1xf32>
    tpu.vector_store %arg6[%c0_8, %c0_9], %8 {strides = array<i32>} : memref<64x1xf32, #tpu.memory_space<vmem>>, vector<64x1xf32>,
    %c0_10 = arith.constant 0 : index
    %c0_11 = arith.constant 0 : index
    %10 = vector.load %arg4[%c0_10, %c0_11] : memref<1x128xf32, #tpu.memory_space<vmem>>, vector<1x128xf32>
    %11 = vector.broadcast %10 : vector<1x128xf32> to vector<64x128xf32>
    %12 = arith.mulf %2, %11 : vector<64x128xf32>
    %cst_12 = arith.constant dense<0.000000e+00> : vector<64xf32>
    %13 = vector.multi_reduction <add>, %12, %cst_12 [1] : vector<64x128xf32> to vector<64xf32>
    %14 = vector.shape_cast %13 : vector<64xf32> to vector<64x1xf32>
    %c0_13 = arith.constant 0 : index
    %c0_14 = arith.constant 0 : index
    %15 = vector.load %arg7[%c0_13, %c0_14] : memref<64x1xf32, #tpu.memory_space<vmem>>, vector<64x1xf32>
    tpu.vector_store %arg7[%c0_13, %c0_14], %14 {strides = array<i32>} : memref<64x1xf32, #tpu.memory_space<vmem>>, vector<64x1xf32>,
    return
  }
  func.func @transform_0(%arg0: i32) -> (i32, i32) {
    %c0_i32 = arith.constant 0 : i32
    %c0_i32_0 = arith.constant 0 : i32
    return %arg0, %c0_i32 : i32, i32
  }
  func.func @transform_1(%arg0: i32) -> (i32, i32) {
    %c0_i32 = arith.constant 0 : i32
    %c0_i32_0 = arith.constant 0 : i32
    %c0_i32_1 = arith.constant 0 : i32
    return %c0_i32, %c0_i32_0 : i32, i32
  }
  func.func @transform_2(%arg0: i32) -> (i32, i32) {
    %c0_i32 = arith.constant 0 : i32
    %c0_i32_0 = arith.constant 0 : i32
    %c0_i32_1 = arith.constant 0 : i32
    return %c0_i32, %c0_i32_0 : i32, i32
  }
  func.func @transform_3(%arg0: i32) -> (i32, i32) {
    %c0_i32 = arith.constant 0 : i32
    %c0_i32_0 = arith.constant 0 : i32
    %c0_i32_1 = arith.constant 0 : i32
    return %c0_i32, %c0_i32_0 : i32, i32
  }
  func.func @transform_4(%arg0: i32) -> (i32, i32) {
    %c0_i32 = arith.constant 0 : i32
    %c0_i32_0 = arith.constant 0 : i32
    return %arg0, %c0_i32 : i32, i32
  }
  func.func @transform_5(%arg0: i32) -> (i32, i32) {
    %c0_i32 = arith.constant 0 : i32
    %c0_i32_0 = arith.constant 0 : i32
    return %arg0, %c0_i32 : i32, i32
  }
  func.func @transform_6(%arg0: i32) -> (i32, i32) {
    %c0_i32 = arith.constant 0 : i32
    %c0_i32_0 = arith.constant 0 : i32
    return %arg0, %c0_i32 : i32, i32
  }
}

</mosaic_0001>

<bundles_post_ra>
// kernel: tpu_custom_call.1
= control target key start
LH: loop header
LB: loop body
LE: loop exit
PB: predicated region body
PF: predicated region fallthrough
CT: control target
= control target key end

     0   :  { %12 = vsyncpa [#allocation3], 0  ;;  %s1291_s0 = inlined_call_operand.hbm [shape: f32[256,128], index: 0, kind: input, shape index: {}]   ;;  %s1292_s1 = inlined_call_operand.hbm [shape: f32[128,128], index: 1, kind: input, shape index: {}]   ;;  %s1293_s2 = inlined_call_operand.vmem [shape: f32[1,128], index: 2, kind: input, shape index: {}]   ;;  %s1294_s3 = inlined_call_operand.vmem [shape: f32[1,128], index: 3, kind: input, shape index: {}]   ;;  %s1295_s4 = inlined_call_operand.hbm [shape: f32[256,128], index: 4, kind: output, shape index: {0}]   ;;  %s1296_s5 = inlined_call_operand.vmem [shape: f32[256,1], index: 5, kind: output, shape index: {1}]   ;;  %s1297_s6 = inlined_call_operand.vmem [shape: f32[256,1], index: 6, kind: output, shape index: {2}]  }
   0x1   :  { %14 = vsyncpa [#allocation3 + $0x1], 0 }
   0x2   :  { %15 = vsyncpa [#allocation6], 0 }
   0x3   :  { %16 = vsyncpa [#allocation4], 0 }
   0x4   :  { %18 = vsyncpa [#allocation4 + $0x1], 0  ;;  %s1046_s21 = smov 0   ;;  %s1048_s22 = smov 0  }
   0x5   :  { %s1050_s23 = smov 0   ;;  %s1052_s24 = smov 0  }
   0x6 LB: > { %s1067_s25 = sadd.s32 4294967295, %s1002_s24   ;;  %s695_s26 = sadd.s32 4294967294, %s1002_s24   ;;  %s1002_s24 = sphi %s1052_s24, %s1322_s24   ;;  %s998_s23 = sphi %s1050_s23, %s1321_s23   ;;  %s994_s22 = sphi %s1048_s22, %s1320_s22   ;;  %s990_s21 = sphi %s1046_s21, %s1319_s21  }
   0x7   : > { %p44_p0 = scmp.ne.s32.totalorder %s994_s22, %s990_s21  ;;  %p1298_p1 = scmp.eq.s32.totalorder %s1067_s25, 0 }
   0x8   : > { %p137_p3 = scmp.eq.s32.totalorder %s695_s26, 3  ;;  %p696_p5 = scmp.ge.s32.totalorder %s1002_s24, 1 }
   0x9   : > { %p1076_p4 = por %p1298_p1, %p44_p0  ;;  %p196_p7 = scmp.lt.s32.totalorder %s1002_s24, 5 }
   0xa   : > { %p1081_p6 = por %p137_p3, %p44_p0  ;;  %s1004_s30 = smov [#allocation5]  }
   0xb   : > { %s1304_s27 = scalar_select %p1076_p4, 1, 0 }
   0xc   : > { %s1305_s28 = scalar_select %p1081_p6, 1, 0 }
   0xd   : > { %p1086_p8 = pnand %p696_p5, %p196_p7  ;;  %s208_s7 = sshll.u32 %s1004_s30, 4  ;;  %s209_s7 = int_to_ptr.vmem [resolvable:$true] %s208_s7 }
   0xe   : > { %s1099_s9 = sadd.s32 1, %s1002_s24   ;;  %s31_s10 = sadd.s32 1, %s998_s23 }
   0xf   : > { %s1306_s29 = scalar_select %p1086_p8, 1, 0 }
  0x10   : > { %p827_p9 = pneg %p1086_p8  ;;  %s28_s11 = ssub.s32 %s1002_s24, %s1099_s9 }
  0x11   : > { %s891_s12 = scalar_lea.vmem %s209_s7, 2048  ;;  %p899_p3 = scmp.lt.s32.totalorder %s209_s7, %s209_s7 }
  0x12   : > { %p1094_p10 = pnand %p827_p9, %p1298_p1  ;;  %p892_p12 = scmp.ne.s32.totalorder %s209_s7, %s891_s12 }
  0x13   : > { %p900_p5 = scmp.lt.s32.totalorder %s891_s12, %s891_s12 }
  0x14   : > { %p882_p11 = pneg %p1094_p10 }
  0x15   : > { %p901_p7 = por %p900_p5, %p899_p3 }
  0x16   : > { %p894_p13 = pnand %p892_p12, %p882_p11 }
  0x18   : > { %p895_p0 = pneg %p894_p13 }
  0x1a   : > { %p902_p2 = pnand %p901_p7, %p895_p0 }
  0x1c   : > { %905 = shalt.err (!%p902_p2)
}
  0x1d   : > { %s1299_s13 = smov 128   ;;  %s1300_s14 = smov 8  }
  0x1e   : > { %830 = dma.hbm_to_vmem [thread:$0]  (!%p1094_p10), %s1292_s1, 2048, %s209_s7, [#allocation6], %s1299_s13, %s1299_s13, %s1300_s14  }
  0x1f   : > { %p29_p2 = scmp.eq.s32.totalorder %s28_s11, 0  ;;  %p38_p9 = scmp.ne.s32.totalorder %s998_s23, %s994_s22 }
  0x20   : > { %p39_p11 = scmp.eq.s32.totalorder %s1002_s24, 0  ;;  %p840_p12 = scmp.lt.s32.totalorder %s1002_s24, 4 }
  0x21   : > { %s1119_s17 = scalar_select %p29_p2, %s998_s23, %s31_s10  }
  0x22   : > { %p40_p13 = por %p39_p11, %p38_p9  ;;  %p1308_p0 = scmp.eq.s32.totalorder %s1067_s25, 3 }
  0x23   : > { %s228_s19 = sand.u32 1, %s998_s23   ;;  %s717_s20 = sshll.u32 %s1002_s24, 10 }
  0x24   : > { %p1123_p3 = por %p1308_p0, %p38_p9  ;;  %s699_s26 = sshll.u32 %s228_s19, 6 }
  0x25   : > { %s1132_s12 = scalar_lea.hbm %s1291_s0, %s717_s20  ;;  %s232_s7 = scalar_lea.vmem [#allocation2], %s699_s26 }
  0x26   : > { %s1309_s18 = scalar_select %p1123_p3, 1, 0 }
  0x27   : > { %s239_s10 = sshll.u32 %s232_s7, 4  ;;  %p1134_p10 = pnand %p840_p12, %p40_p13  ;;  %s1138_s10 = int_to_ptr.vmem [resolvable:$true] %s239_s10 }
  0x28   : > { %s1140_s15 = scalar_lea.sflag [#allocation3], %s228_s19  ;;  %s906_s16 = scalar_lea.hbm %s1132_s12, 1024 }
  0x29   : > { %p907_p5 = scmp.ne.s32.totalorder %s1132_s12, %s906_s16  ;;  %p908_p7 = pneg %p1134_p10 }
  0x2a   : > { %s911_s26 = scalar_lea.hbm %s1291_s0, 4096  ;;  %p912_p11 = scmp.lt.s32.totalorder %s1132_s12, %s1291_s0 }
  0x2b   : > { %p909_p2 = pnand %p908_p7, %p907_p5  ;;  %p913_p12 = scmp.lt.s32.totalorder %s911_s26, %s906_s16 }
  0x2d   : > { %p910_p9 = pneg %p909_p2  ;;  %p914_p13 = por %p913_p12, %p912_p11 }
  0x2f   : > { %p915_p0 = pnand %p914_p13, %p910_p9 }
  0x31   : > { %918 = shalt.err (!%p915_p0)
}
  0x32   : > { %s919_s19 = scalar_lea.vmem %s1138_s10, 1024  ;;  %s1007_s13 = smov [#allocation2]  }
  0x33   : > { %p920_p1 = scmp.ne.s32.totalorder %s1138_s10, %s919_s19  ;;  %s924_s14 = sshll.u32 %s1007_s13, 4  ;;  %s925_s14 = int_to_ptr.vmem [resolvable:$false] %s924_s14 }
  0x34   : > { %s926_s20 = scalar_lea.vmem %s925_s14, 2048  ;;  %p927_p2 = scmp.lt.s32.totalorder %s1138_s10, %s925_s14 }
  0x35   : > { %p922_p6 = pnand %p920_p1, %p908_p7  ;;  %p928_p3 = scmp.lt.s32.totalorder %s926_s20, %s919_s19 }
  0x37   : > { %p923_p5 = pneg %p922_p6  ;;  %p929_p4 = por %p928_p3, %p927_p2 }
  0x39   : > { %p930_p8 = pnand %p929_p4, %p923_p5 }
  0x3b   : > { %933 = shalt.err (!%p930_p8)
}
  0x3c   : > { %s1311_s16 = smov 8   ;;  %s1312_s30 = smov 128  }
  0x3d   : > { %834 = dma.hbm_to_vmem [thread:$0]  (!%p1134_p10), %s1132_s12, 1024, %s1138_s10, %s1140_s15, %s1312_s30, %s1312_s30, %s1311_s16  }
  0x3e   : > { %p1313_p1 = scmp.ne.s32.totalorder %s1306_s29, 0 }
  0x3f   : > { %s1167_s13 = sand.u32 (!%p1313_p1), 1, %s994_s22   ;;  %p1314_p4 = scmp.ne.s32.totalorder (!%p1313_p1), %s1304_s27, 0 }
  0x40   : > { %251 = sbr.rel (%p1313_p1) target bundleno = 469 (0x1d5), region = 36  ;;  %s703_s14 = sshll.u32 (!%p1313_p1), %s1167_s13, 6 }
  0x41   : > { %s254_s26 = scalar_lea.sflag (!%p1313_p1), [#allocation3], %s1167_s13  ;;  %s1173_s11 = scalar_lea.vmem (!%p1313_p1), [#allocation2], %s703_s14 }
  0x45   : > { %977 = dma.done.wait (%p1314_p4), %s254_s26, 1024  }
  0x46   : > { %979 = vsyncadd (%p1314_p4), %s254_s26, 4294966272  ;;  %p1315_p6 = scmp.eq.s32.totalorder %s1067_s25, 0 }
  0x48   : > { %981 = dma.done.wait (%p1315_p6), [#allocation6], 2048   ;;  %p1316_p8 = pmov %p1315_p6 }
  0x49   : > { %v337_v0 = vld [vmem:[#allocation5 + $0x78] sm:$0xff]  ;;  %v336_v1 = vld [vmem:[#allocation5 + $0x70] sm:$0xff]  ;;  %v335_v2 = vld [vmem:[#allocation5 + $0x68] sm:$0xff]  ;;  %s1196_s12 = scalar_lea.vmem [#allocation7], %s703_s14  ;;  %s718_s7 = sshll.u32 %s1067_s25, 10 }
  0x4a   : > { %983 = vsyncadd (%p1316_p8), [#allocation6], 4294965248  ;;  %743 = vmatprep.subr.mxu0 %v337_v0  ;;  %787 = vmatprep.subr.mxu1 %v337_v0  ;;  %v334_v3 = vld [vmem:[#allocation5 + $0x60] sm:$0xff]  ;;  %v333_v4 = vld [vmem:[#allocation5 + $0x58] sm:$0xff]  ;;  %s554_s8 = sshll.u32 %s1196_s12, 4  ;;  %s1216_s16 = scalar_lea.hbm %s1295_s4, %s718_s7  ;;  %s1210_s8 = int_to_ptr.vmem [resolvable:$true] %s554_s8 }
  0x4b   : > { %744 = vmatpush3.msra.mxu0 %v337_v0  ;;  %803 = vmatpush3.msra.mxu1 %v337_v0  ;;  %v332_v5 = vld [vmem:[#allocation5 + $0x50] sm:$0xff]  ;;  %v331_v6 = vld [vmem:[#allocation5 + $0x48] sm:$0xff]  ;;  %v330_v7 = vld [vmem:[#allocation5 + $0x40] sm:$0xff]  ;;  %s531_s30 = scalar_lea.sflag [#allocation4], %s1167_s13  ;;  %s934_s14 = scalar_lea.vmem %s1210_s8, 1024 }
  0x4c   : > { %745 = vmatprep.subr.mxu0 %v336_v1  ;;  %788 = vmatprep.subr.mxu1 %v336_v1  ;;  %v329_v8 = vld [vmem:[#allocation5 + $0x38] sm:$0xff]  ;;  %v328_v9 = vld [vmem:[#allocation5 + $0x30] sm:$0xff]  ;;  %v327_v10 = vld [vmem:[#allocation5 + $0x28] sm:$0xff]  ;;  %p935_p3 = scmp.ne.s32.totalorder %s1210_s8, %s934_s14  ;;  %p1317_p10 = scmp.ne.s32.totalorder %s1309_s18, 0 }
  0x4d   : > { %746 = vmatpush3.msra.mxu0 %v336_v1  ;;  %804 = vmatpush3.msra.mxu1 %v336_v1  ;;  %v326_v11 = vld [vmem:[#allocation5 + $0x20] sm:$0xff]  ;;  %v325_v12 = vld [vmem:[#allocation5 + $0x18] sm:$0xff]  ;;  %v324_v13 = vld [vmem:[#allocation5 + $0x10] sm:$0xff]  ;;  %s1008_s26 = smov [#allocation7]  }
  0x4e   : > { %747 = vmatprep.subr.mxu0 %v335_v2  ;;  %789 = vmatprep.subr.mxu1 %v335_v2  ;;  %v323_v14 = vld [vmem:[#allocation5 + $0x8] sm:$0xff]  ;;  %v322_v15 = vld [vmem:[#allocation5] sm:$0xff]  ;;  %v316_v20 = vld [vmem:[%s1173_s11 + $0x10] sm:$0xff]  ;;  %p936_p7 = pnand %p935_p3, %p1317_p10 }
  0x4f   : > { %748 = vmatpush3.msra.mxu0 %v335_v2  ;;  %805 = vmatpush3.msra.mxu1 %v335_v2  ;;  %v314_v16 = vld [vmem:[%s1173_s11] sm:$0xff]  ;;  %v315_v18 = vld [vmem:[%s1173_s11 + $0x8] sm:$0xff]  ;;  %v320_v21 = vld [vmem:[%s1173_s11 + $0x30] sm:$0xff] }
  0x50   : > { %749 = vmatprep.subr.mxu0 %v334_v3  ;;  %790 = vmatprep.subr.mxu1 %v334_v3  ;;  %v318_v17 = vld [vmem:[%s1173_s11 + $0x20] sm:$0xff]  ;;  %v319_v19 = vld [vmem:[%s1173_s11 + $0x28] sm:$0xff]  ;;  %v317_v22 = vld [vmem:[%s1173_s11 + $0x18] sm:$0xff]  ;;  %p937_p9 = pneg %p936_p7 }
  0x51   : > { %750 = vmatpush3.msra.mxu0 %v334_v3  ;;  %806 = vmatpush3.msra.mxu1 %v334_v3  ;;  %v321_v23 = vld [vmem:[%s1173_s11 + $0x38] sm:$0xff]  ;;  %v710_v24 = vld [vmem:[%s1293_s2] ss:$0 sm:$0xff]  ;;  %s938_s11 = sshll.u32 %s1008_s26, 4  ;;  %s939_s11 = int_to_ptr.vmem [resolvable:$false] %s938_s11 }
  0x52   : > { %751 = vmatprep.subr.mxu0 %v333_v4  ;;  %791 = vmatprep.subr.mxu1 %v333_v4  ;;  %v711_v31 = vld [vmem:[%s1294_s3] ss:$0 sm:$0xff]  ;;  %s940_s27 = scalar_lea.vmem %s939_s11, 2048  ;;  %p941_p11 = scmp.lt.s32.totalorder %s1210_s8, %s939_s11 }
  0x53   : > { %752 = vmatpush3.msra.mxu0 %v333_v4  ;;  %807 = vmatpush3.msra.mxu1 %v333_v4  ;;  %p942_p12 = scmp.lt.s32.totalorder %s940_s27, %s934_s14 }
  0x54   : > { %753 = vmatprep.subr.mxu0 %v332_v5  ;;  %792 = vmatprep.subr.mxu1 %v332_v5 }
  0x55   : > { %754 = vmatpush3.msra.mxu0 %v332_v5  ;;  %808 = vmatpush3.msra.mxu1 %v332_v5  ;;  %p943_p13 = por %p942_p12, %p941_p11 }
  0x56   : > { %755 = vmatprep.subr.mxu0 %v331_v6  ;;  %793 = vmatprep.subr.mxu1 %v331_v6 }
  0x57   : > { %756 = vmatpush3.msra.mxu0 %v331_v6  ;;  %809 = vmatpush3.msra.mxu1 %v331_v6  ;;  %p944_p0 = pnand %p943_p13, %p937_p9 }
  0x58   : > { %757 = vmatprep.subr.mxu0 %v330_v7  ;;  %794 = vmatprep.subr.mxu1 %v330_v7 }
  0x59   : > { %758 = vmatpush3.msra.mxu0 %v330_v7  ;;  %810 = vmatpush3.msra.mxu1 %v330_v7 }
  0x5a   : > { %759 = vmatprep.subr.mxu0 %v329_v8  ;;  %795 = vmatprep.subr.mxu1 %v329_v8 }
  0x5b   : > { %760 = vmatpush3.msra.mxu0 %v329_v8  ;;  %811 = vmatpush3.msra.mxu1 %v329_v8 }
  0x5c   : > { %761 = vmatprep.subr.mxu0 %v328_v9  ;;  %796 = vmatprep.subr.mxu1 %v328_v9 }
  0x5d   : > { %762 = vmatpush3.msra.mxu0 %v328_v9  ;;  %812 = vmatpush3.msra.mxu1 %v328_v9 }
  0x5e   : > { %763 = vmatprep.subr.mxu0 %v327_v10  ;;  %797 = vmatprep.subr.mxu1 %v327_v10 }
  0x5f   : > { %764 = vmatpush3.msra.mxu0 %v327_v10  ;;  %813 = vmatpush3.msra.mxu1 %v327_v10 }
  0x60   : > { %765 = vmatprep.subr.mxu0 %v326_v11  ;;  %798 = vmatprep.subr.mxu1 %v326_v11 }
  0x61   : > { %766 = vmatpush3.msra.mxu0 %v326_v11  ;;  %814 = vmatpush3.msra.mxu1 %v326_v11 }
  0x62   : > { %767 = vmatprep.subr.mxu0 %v325_v12  ;;  %799 = vmatprep.subr.mxu1 %v325_v12 }
  0x63   : > { %768 = vmatpush3.msra.mxu0 %v325_v12  ;;  %815 = vmatpush3.msra.mxu1 %v325_v12 }
  0x64   : > { %769 = vmatprep.subr.mxu0 %v324_v13  ;;  %800 = vmatprep.subr.mxu1 %v324_v13 }
  0x65   : > { %770 = vmatpush3.msra.mxu0 %v324_v13  ;;  %816 = vmatpush3.msra.mxu1 %v324_v13 }
  0x66   : > { %771 = vmatprep.subr.mxu0 %v323_v14  ;;  %801 = vmatprep.subr.mxu1 %v323_v14 }
  0x67   : > { %772 = vmatpush3.msra.mxu0 %v323_v14  ;;  %817 = vmatpush3.msra.mxu1 %v323_v14 }
  0x68   : > { %773 = vmatprep.subr.mxu0 %v322_v15  ;;  %802 = vmatprep.subr.mxu1 %v322_v15 }
  0x69   : > { %774 = vmatpush3.msra.mxu0 %v322_v15  ;;  %818 = vmatpush3.msra.mxu1 %v322_v15 }
  0x6a   : > { %775 = vmatprep.mubr.f32.mxu0 %v314_v16  ;;  %781 = vmatprep.mubr.f32.mxu1 %v318_v17 }
  0x6b   : > { %776 = vmatmul.mubr.f32.vlgmr.msra.gmra.mxu0 %v315_v18  ;;  %782 = vmatmul.mubr.f32.vlgmr.msra.gmra.mxu1 %v319_v19 }
  0x6c   : > { %778 = vmatprep.mubr.f32.mxu0 %v316_v20  ;;  %784 = vmatprep.mubr.f32.mxu1 %v320_v21 }
  0x6f   : > { %779 = vmatmul.mubr.f32.gmra.mxu0 %v317_v22  ;;  %785 = vmatmul.mubr.f32.gmra.mxu1 %v321_v23 }
 0x12b   : > { %v777_v25 = vpop.f32.mrf.mxu0  ;;  %v783_v26 = vpop.f32.mrf.mxu1 }
 0x12c   : > { %444 = vst [vmem:[%s1196_s12 + $0x8] sm:$0xff] %v777_v25  ;;  %448 = vst [vmem:[%s1196_s12 + $0x28] sm:$0xff] %v783_v26  ;;  %v463_v27 = vmul.f32 %v783_v26, %v710_v24  ;;  %v459_v28 = vmul.f32 %v777_v25, %v710_v24  ;;  %v499_v34 = vmul.f32 %v777_v25, %v711_v31 }
 0x12d   : > { %v404_v29 = vpop.f32.mrf.mxu0  ;;  %v424_v30 = vpop.f32.mrf.mxu1  ;;  %v503_v38 = vmul.f32 %v783_v26, %v711_v31 }
 0x12e   : > { %443 = vst [vmem:[%s1196_s12] sm:$0xff] %v404_v29  ;;  %447 = vst [vmem:[%s1196_s12 + $0x20] sm:$0xff] %v424_v30  ;;  %476 = vadd.xlane.f32.xlu1 %v463_v27  ;;  %468 = vadd.xlane.f32.xlu0 %v459_v28  ;;  %v458_v35 = vmul.f32 %v710_v24, %v404_v29  ;;  %v462_v39 = vmul.f32 %v710_v24, %v424_v30 }
 0x12f   : > { %v780_v32 = vpop.f32.mrf.mxu0  ;;  %v786_v33 = vpop.f32.mrf.mxu1  ;;  %v498_v41 = vmul.f32 %v711_v31, %v404_v29  ;;  %v502_v43 = vmul.f32 %v711_v31, %v424_v30 }
 0x130   : > { %446 = vst [vmem:[%s1196_s12 + $0x18] sm:$0xff] %v780_v32  ;;  %450 = vst [vmem:[%s1196_s12 + $0x38] sm:$0xff] %v786_v33  ;;  %v461_v40 = vmul.f32 %v780_v32, %v710_v24  ;;  %v465_v42 = vmul.f32 %v786_v33, %v710_v24  ;;  %v501_v45 = vmul.f32 %v780_v32, %v711_v31 }
 0x131   : > { %v414_v36 = vpop.f32.mrf.mxu0  ;;  %v434_v37 = vpop.f32.mrf.mxu1  ;;  %v505_v49 = vmul.f32 %v786_v33, %v711_v31 }
 0x132   : > { %508 = vadd.xlane.f32.xlu1 %v499_v34  ;;  %466 = vadd.xlane.f32.xlu0 %v458_v35  ;;  %445 = vst [vmem:[%s1196_s12 + $0x10] sm:$0xff] %v414_v36  ;;  %449 = vst [vmem:[%s1196_s12 + $0x30] sm:$0xff] %v434_v37  ;;  %v464_v44 = vmul.f32 %v710_v24, %v434_v37  ;;  %v500_v46 = vmul.f32 %v711_v31, %v414_v36 }
 0x133   : > { %v460_v47 = vmul.f32 %v710_v24, %v414_v36  ;;  %v504_v48 = vmul.f32 %v711_v31, %v434_v37 }
 0x136   : > { %516 = vadd.xlane.f32.xlu1 %v503_v38  ;;  %474 = vadd.xlane.f32.xlu0 %v462_v39 }
 0x13a   : > { %506 = vadd.xlane.f32.xlu0 %v498_v41  ;;  %472 = vadd.xlane.f32.xlu1 %v461_v40 }
 0x13e   : > { %514 = vadd.xlane.f32.xlu0 %v502_v43  ;;  %480 = vadd.xlane.f32.xlu1 %v465_v42 }
 0x142   : > { %478 = vadd.xlane.f32.xlu0 %v464_v44  ;;  %512 = vadd.xlane.f32.xlu1 %v501_v45 }
 0x146   : > { %510 = vadd.xlane.f32.xlu0 %v500_v46  ;;  %470 = vadd.xlane.f32.xlu1 %v460_v47 }
 0x14a   : > { %518 = vadd.xlane.f32.xlu0 %v504_v48  ;;  %520 = vadd.xlane.f32.xlu1 %v505_v49 }
 0x14b   : > { %947 = shalt.err (!%p944_p0)
}
 0x14c   : > { %s948_s29 = scalar_lea.hbm %s1216_s16, 1024  ;;  %s952_s15 = scalar_lea.hbm %s1295_s4, 4096 }
 0x14d   : > { %p949_p5 = scmp.ne.s32.totalorder %s1216_s16, %s948_s29  ;;  %p953_p4 = scmp.lt.s32.totalorder %s1216_s16, %s1295_s4 }
 0x14e   : > { %p954_p6 = scmp.lt.s32.totalorder %s952_s15, %s948_s29 }
 0x14f   : > { %p950_p2 = pnand %p949_p5, %p1317_p10 }
 0x150   : > { %p955_p8 = por %p954_p6, %p953_p4 }
 0x151   : > { %p951_p1 = pneg %p950_p2 }
 0x153   : > { %p956_p3 = pnand %p955_p8, %p951_p1 }
 0x155   : > { %959 = shalt.err (!%p956_p3)
}
 0x156   : > { %s1009_s20 = smov 128   ;;  %s1010_s14 = smov 8   ;;  %vm482_vm0 = vcmask 7168  }
 0x157   : > { %825 = dma.vmem_to_hbm [thread:$0]  (%p1317_p10), %s1210_s8, 1024, %s1216_s16, %s531_s30, %s1009_s20, %s1009_s20, %s1010_s14  }
 0x158   : > { %s706_s26 = sshll.u32 %s1067_s25, 3 }
 0x159   : > { %p303_p7 = scmp.lt.s32.totalorder %s706_s26, 31 }
 0x15b   : > { %s1324_s26 = smov (!%p303_p7, %s706_s26), 31 }
 0x15c   : > { %s707_s11 = sshll.u32 %s1324_s26, 3 }
 0x15d   : > { %s1245_s29 = scalar_lea.vmem %s1296_s5, %s707_s11  ;;  %s312_s13 = scalar_lea.vmem %s1297_s6, %s707_s11 }
 0x1b7   : > { %v477_v50 = vpop.xlane.xlu1 %476  ;;  %v469_v51 = vpop.xlane.xlu0 %468 }
 0x1b8   : > { %488 = vst.msk [vmem:[%s1245_s29 + $0x28] sm:$0xff] %vm482_vm0, %v477_v50  ;;  %484 = vst.msk [vmem:[%s1245_s29 + $0x8] sm:$0xff] %vm482_vm0, %v469_v51 }
 0x1bb   : > { %v509_v52 = vpop.xlane.xlu1 %508  ;;  %v467_v53 = vpop.xlane.xlu0 %466 }
 0x1bc   : > { %523 = vst.msk [vmem:[%s312_s13 + $0x8] sm:$0xff] %vm482_vm0, %v509_v52  ;;  %483 = vst.msk [vmem:[%s1245_s29] sm:$0xff] %vm482_vm0, %v467_v53 }
 0x1bf   : > { %v517_v54 = vpop.xlane.xlu1 %516  ;;  %v475_v55 = vpop.xlane.xlu0 %474 }
 0x1c0   : > { %527 = vst.msk [vmem:[%s312_s13 + $0x28] sm:$0xff] %vm482_vm0, %v517_v54  ;;  %487 = vst.msk [vmem:[%s1245_s29 + $0x20] sm:$0xff] %vm482_vm0, %v475_v55 }
 0x1c3   : > { %v507_v56 = vpop.xlane.xlu0 %506  ;;  %v473_v57 = vpop.xlane.xlu1 %472 }
 0x1c4   : > { %522 = vst.msk [vmem:[%s312_s13] sm:$0xff] %vm482_vm0, %v507_v56  ;;  %486 = vst.msk [vmem:[%s1245_s29 + $0x18] sm:$0xff] %vm482_vm0, %v473_v57 }
 0x1c7   : > { %v515_v58 = vpop.xlane.xlu0 %514  ;;  %v481_v59 = vpop.xlane.xlu1 %480 }
 0x1c8   : > { %526 = vst.msk [vmem:[%s312_s13 + $0x20] sm:$0xff] %vm482_vm0, %v515_v58  ;;  %490 = vst.msk [vmem:[%s1245_s29 + $0x38] sm:$0xff] %vm482_vm0, %v481_v59 }
 0x1cb   : > { %v479_v60 = vpop.xlane.xlu0 %478  ;;  %v513_v61 = vpop.xlane.xlu1 %512 }
 0x1cc   : > { %489 = vst.msk [vmem:[%s1245_s29 + $0x30] sm:$0xff] %vm482_vm0, %v479_v60  ;;  %525 = vst.msk [vmem:[%s312_s13 + $0x18] sm:$0xff] %vm482_vm0, %v513_v61 }
 0x1cf   : > { %v511_v62 = vpop.xlane.xlu0 %510  ;;  %v471_v63 = vpop.xlane.xlu1 %470 }
 0x1d0   : > { %524 = vst.msk [vmem:[%s312_s13 + $0x10] sm:$0xff] %vm482_vm0, %v511_v62  ;;  %485 = vst.msk [vmem:[%s1245_s29 + $0x10] sm:$0xff] %vm482_vm0, %v471_v63 }
 0x1d3   : > { %v519_v0 = vpop.xlane.xlu0 %518  ;;  %v521_v1 = vpop.xlane.xlu1 %520 }
 0x1d4   : > { %528 = vst.msk [vmem:[%s312_s13 + $0x30] sm:$0xff] %vm482_vm0, %v519_v0  ;;  %529 = vst.msk [vmem:[%s312_s13 + $0x38] sm:$0xff] %vm482_vm0, %v521_v1 }
 0x1d5 PF: > { %p842_p10 = scmp.ge.s32.totalorder %s1002_s24, 2  ;;  %s577_s8 = sand.u32 1, %s990_s21  }
 0x1d6   : > { %p1318_p9 = scmp.ne.s32.totalorder %s1305_s28, 0  ;;  %s578_s16 = scalar_lea.sflag [#allocation4], %s577_s8 }
 0x1d8   : > { %p836_p11 = pnand %p842_p10, %p1318_p9 }
 0x1da   : > { %p837_p12 = pneg %p836_p11 }
 0x1dc   : > { %985 = dma.done.wait (%p837_p12), %s578_s16, 1024  }
 0x1dd   : > { %987 = vsyncadd (%p837_p12), %s578_s16, 4294966272  ;;  %p21_p13 = scmp.ge.s32.totalorder %s1099_s9, 6   ;;  %s1319_s21 = smov %s994_s22 }
 0x1de   : > { %s1320_s22 = smov %s998_s23  ;;  %s1321_s23 = smov %s1119_s17 }
 0x1df   : > { %s1322_s24 = smov %s1099_s9  ;;  %23 = sbr.rel (!%p21_p13) target bundleno = 6 (0x6), region = 109 }
 0x1e4   :  { %599 = vsyncpa [#allocation3], 1 }
 0x1e5   :  { %601 = vsyncpa [#allocation3 + $0x1], 1 }
 0x1e6   :  { %602 = vsyncpa [#allocation6], 1 }
 0x1e7   :  { %603 = vsyncpa [#allocation4], 1 }
 0x1e8   :  { %605 = vsyncpa [#allocation4 + $0x1], 1 }

</bundles_post_ra>
